<compile_context>
chip_gen: v7x
topology: tpu7x:2x2x1
jax: 0.10.0
libtpu: 0.0.40
codegen_flags: <defaults>
</compile_context>

<pallas_src>
import functools
import math

import jax
import jax.numpy as jnp
from jax import lax
from jax.experimental import pallas as pl
from jax.experimental.pallas import tpu as pltpu

LRELU_SLOPE = 0.2
INV_SQRT2 = 1.0 / math.sqrt(2.0)
_HALO = 4            # zero-padded halo rows on each side of a time tile
_LANES = 128         # lane width: channel padding target


def _round_up(x, m):
    return (x + m - 1) // m * m


def _resblock1d_kernel(x_ref, w1_ref, b1_ref, w2_ref, b2_ref, wsc_ref, o_ref,
                       *, tl, seq_len, slope):
    # x_ref  : (1, 1, TL + 2*HALO, Cp)  window for this (batch, time-tile)
    # w1_ref : (3*Cp, Cp)    conv1 weights, im2col layout [tap*Cp + cin, cout]
    # b1_ref : (1, Cp)       fp32
    # w2_ref : (3*Cp, Cop)
    # b2_ref : (1, Cop)      fp32
    # wsc_ref: (Cp, Cop)     1x1 shortcut conv (no bias)
    # o_ref  : (1, TL, Cop)
    t = pl.program_id(1)
    xw = x_ref[0, 0]                                        # (TW, Cp), compute dtype

    # --- shortcut: 1x1 conv on the central TL rows (raw x, no bias) ---
    sc = jnp.dot(xw[_HALO:_HALO + tl, :], wsc_ref[...],
                 preferred_element_type=jnp.float32)        # (TL, Cop) fp32

    # --- residual branch ---
    # norm1 = Identity, dropout = no-op (eval).  LeakyReLU in fp32 on the VPU,
    # then back to the (bf16) compute dtype that feeds the MXU.
    xf = xw.astype(jnp.float32)
    h = jnp.where(xf >= 0, xf, slope * xf).astype(xw.dtype)  # (TW, Cp)

    # conv1 evaluated on TL+2 rows (absolute positions s-1 .. s+TL) so conv2
    # has its own halo without touching HBM again.  Single K=3*Cp matmul.
    a1 = jnp.concatenate(
        [h[2:2 + tl + 2, :], h[3:3 + tl + 2, :], h[4:4 + tl + 2, :]], axis=1)
    c1 = jnp.dot(a1, w1_ref[...], preferred_element_type=jnp.float32)
    c1 = c1 + b1_ref[...]                                   # (TL+2, Cp) fp32

    # pool/norm2 = Identity, dropout = no-op.  LeakyReLU, then zero the rows
    # whose absolute time position falls outside [0, L): this reproduces
    # conv2's zero padding at the true sequence ends and kills the padded
    # tail when L is not a multiple of the tile.
    h2 = jnp.where(c1 >= 0, c1, slope * c1)
    pos = lax.broadcasted_iota(jnp.int32, (tl + 2, 1), 0) + (t * tl - 1)
    h2 = jnp.where((pos >= 0) & (pos < seq_len), h2, 0.0).astype(xw.dtype)

    a2 = jnp.concatenate(
        [h2[0:tl, :], h2[1:1 + tl, :], h2[2:2 + tl, :]], axis=1)
    c2 = jnp.dot(a2, w2_ref[...], preferred_element_type=jnp.float32)
    c2 = c2 + b2_ref[...]                                   # (TL, Cop) fp32

    o_ref[0] = ((sc + c2) * INV_SQRT2).astype(o_ref.dtype)


def resblock1d_pallas_nlc(x_blc, w1, b1, w2, b2, wsc, *,
                          time_tile=512,
                          compute_dtype=jnp.bfloat16,
                          out_dtype=None):
    """Time-major core.  x_blc: (B, L, Cin).  Weights in PyTorch conv layout:
    w1 (Cin, Cin, 3), w2 (Cout, Cin, 3), wsc (Cout, Cin, 1).
    Returns (B, L, Cout).  time_tile ~512 fits all generations (incl. v7x's
    64 MiB VMEM); it can be raised to 1024-2048 on v5e/v6e."""
    B, L, Cin = x_blc.shape
    Cout = w2.shape[0]
    out_dtype = x_blc.dtype if out_dtype is None else out_dtype

    cp = _round_up(Cin, _LANES)            # lane-dense input channels
    cop = _round_up(Cout, _LANES)          # lane-dense output channels
    tl = min(_round_up(time_tile, 8), _round_up(L, 8))
    lp = _round_up(L, tl)
    nt = lp // tl
    tw = tl + 2 * _HALO

    # --- operand prep (cheap, fused by XLA): cast to the MXU dtype, pad
    # channels to 128 lanes, pad time with the conv halo, and materialize the
    # per-tile overlapping windows so plain BlockSpecs can pipeline them
    # (no in-kernel zero-pad concatenate, no unaligned manual DMA).
    xc = x_blc.astype(compute_dtype)
    x_halo = jnp.pad(xc, ((0, 0), (_HALO, lp - L + _HALO), (0, cp - Cin)))
    main = x_halo[:, :lp, :].reshape(B, nt, tl, cp)
    tail_last = x_halo[:, lp:, :][:, None]                  # (B, 1, 8, cp)
    if nt > 1:
        tails = jnp.concatenate([main[:, 1:, :2 * _HALO, :], tail_last], axis=1)
    else:
        tails = tail_last
    x_win = jnp.concatenate([main, tails], axis=2)          # (B, nt, tw, cp)

    def _pack_conv3(w, ci_pad, co_pad):
        # (O, I, 3) torch layout -> (3*ci_pad, co_pad), rows tap-major.
        wp = jnp.pad(w, ((0, co_pad - w.shape[0]), (0, ci_pad - w.shape[1]), (0, 0)))
        return jnp.transpose(wp, (2, 1, 0)).reshape(3 * ci_pad, co_pad).astype(compute_dtype)

    w1_k = _pack_conv3(w1, cp, cp)                          # (3*cp, cp)
    w2_k = _pack_conv3(w2, cp, cop)                         # (3*cp, cop)
    wsc_k = jnp.transpose(
        jnp.pad(wsc[:, :, 0], ((0, cop - Cout), (0, cp - Cin))),
        (1, 0)).astype(compute_dtype)                       # (cp, cop)
    b1_k = jnp.pad(b1, (0, cp - Cin)).astype(jnp.float32)[None, :]
    b2_k = jnp.pad(b2, (0, cop - Cout)).astype(jnp.float32)[None, :]

    kernel = functools.partial(_resblock1d_kernel, tl=tl, seq_len=L,
                               slope=LRELU_SLOPE)

    out = pl.pallas_call(
        kernel,
        out_shape=jax.ShapeDtypeStruct((B, lp, cop), out_dtype),
        grid_spec=pltpu.PrefetchScalarGridSpec(
            num_scalar_prefetch=0,
            grid=(B, nt),
            in_specs=[
                pl.BlockSpec((1, 1, tw, cp), lambda b, t: (b, t, 0, 0)),
                pl.BlockSpec((3 * cp, cp), lambda b, t: (0, 0)),
                pl.BlockSpec((1, cp), lambda b, t: (0, 0)),
                pl.BlockSpec((3 * cp, cop), lambda b, t: (0, 0)),
                pl.BlockSpec((1, cop), lambda b, t: (0, 0)),
                pl.BlockSpec((cp, cop), lambda b, t: (0, 0)),
            ],
            out_specs=pl.BlockSpec((1, tl, cop), lambda b, t: (b, t, 0)),
        ),
        compiler_params=pltpu.CompilerParams(
            dimension_semantics=("parallel", "parallel"),
            vmem_limit_bytes=64 * 1024 * 1024),
    )(x_win, w1_k, b1_k, w2_k, b2_k, wsc_k)

    return out[:, :L, :Cout]


def resblock1d_pallas(x_ncl, w1, b1, w2, b2, wsc, **kw):
    """PyTorch NCL interface: x (B, Cin, L) -> (B, Cout, L).
    # TODO(synk): keep activations time-major (B, L, C) across the whole model
    # so these two HBM transposes disappear (use resblock1d_pallas_nlc)."""
    y = resblock1d_pallas_nlc(jnp.transpose(x_ncl, (0, 2, 1)),
                              w1, b1, w2, b2, wsc, **kw)
    return jnp.transpose(y, (0, 2, 1))


# ------------- parameter setup (weight_norm) + pure-JAX reference -------------

def apply_weight_norm(v, g):
    """v: (O, I, K), g: (O,) -> g * v / ||v||_(I,K)  (torch weight_norm, dim=0)."""
    nrm = jnp.sqrt(jnp.sum(v * v, axis=(1, 2), keepdims=True))
    return v * (g[:, None, None] / nrm)


def ref_forward(x, w1, b1, w2, b2, wsc, slope=LRELU_SLOPE):
    def conv1d(h, w, b, pad):
        out = lax.conv_general_dilated(
            h, w, window_strides=(1,), padding=[(pad, pad)],
            dimension_numbers=("NCH", "OIH", "NCH"))
        if b is not None:
            out = out + b[None, :, None]
        return out

    sc = conv1d(x, wsc, None, 0)
    h = jnp.where(x >= 0, x, slope * x)
    h = conv1d(h, w1, b1, 1)
    h = jnp.where(h >= 0, h, slope * h)
    h = conv1d(h, w2, b2, 1)
    return (sc + h) * INV_SQRT2


if __name__ == "__main__":
    B, Cin, Cout, L = 2, 4, 8, 20
    key = jax.random.PRNGKey(0)
    ks = jax.random.split(key, 9)

    x = jax.random.normal(ks[0], (B, Cin, L), jnp.float32)

    # Deterministic synthetic weight_norm parameters (v, g) + biases.
    v1 = 0.3 * jax.random.normal(ks[1], (Cin, Cin, 3), jnp.float32)
    g1 = 0.5 + 0.5 * jax.random.uniform(ks[2], (Cin,), jnp.float32)
    b1 = 0.1 * jax.random.normal(ks[3], (Cin,), jnp.float32)

    v2 = 0.3 * jax.random.normal(ks[4], (Cout, Cin, 3), jnp.float32)
    g2 = 0.5 + 0.5 * jax.random.uniform(ks[5], (Cout,), jnp.float32)
    b2 = 0.1 * jax.random.normal(ks[6], (Cout,), jnp.float32)

    vsc = 0.3 * jax.random.normal(ks[7], (Cout, Cin, 1), jnp.float32)
    gsc = 0.5 + 0.5 * jax.random.uniform(ks[8], (Cout,), jnp.float32)

    w1 = apply_weight_norm(v1, g1)     # conv1   (Cin, Cin, 3)
    w2 = apply_weight_norm(v2, g2)     # conv2   (Cout, Cin, 3)
    wsc = apply_weight_norm(vsc, gsc)  # conv1x1 (Cout, Cin, 1), bias=False

    ref = ref_forward(x, w1, b1, w2, b2, wsc)

    # 1) fp32 compute, tiny time tiles: exercises the multi-tile halo path and
    #    the boundary masking (L=20 is not a multiple of the 8-row tile).
    out_f32 = resblock1d_pallas(x, w1, b1, w2, b2, wsc,
                                time_tile=8, compute_dtype=jnp.float32)
    out_f32 = jax.block_until_ready(out_f32)
    assert out_f32.shape == (B, Cout, L), out_f32.shape
    assert jnp.allclose(out_f32, ref, rtol=1e-3, atol=1e-3), \
        float(jnp.max(jnp.abs(out_f32 - ref)))

    # 2) default fast path: bf16 MXU operands, fp32 accumulation, one tile.
    out_bf = resblock1d_pallas(x, w1, b1, w2, b2, wsc)
    out_bf = jax.block_until_ready(out_bf)
    assert out_bf.shape == (B, Cout, L), out_bf.shape
    assert jnp.allclose(out_bf, ref, rtol=5e-2, atol=5e-2), \
        float(jnp.max(jnp.abs(out_bf - ref)))

    print("KERNEL_OK")
</pallas_src>

<mosaic_0001>
module attributes {stable_mosaic.version = 11 : i64} {
  func.func @_resblock1d_kernel(%arg0: i32, %arg1: i32, %arg2: memref<1x1x16x128xf32, #tpu.memory_space<vmem>>, %arg3: memref<384x128xf32, #tpu.memory_space<vmem>>, %arg4: memref<1x128xf32, #tpu.memory_space<vmem>>, %arg5: memref<384x128xf32, #tpu.memory_space<vmem>>, %arg6: memref<1x128xf32, #tpu.memory_space<vmem>>, %arg7: memref<128x128xf32, #tpu.memory_space<vmem>>, %arg8: memref<1x8x128xf32, #tpu.memory_space<vmem>>) attributes {dimension_semantics = [#tpu.dimension_semantics<parallel>, #tpu.dimension_semantics<parallel>], iteration_bounds = array<i64: 2, 3>, scalar_prefetch = 0 : i64, scratch_operands = 0 : i64, tpu.core_type = #tpu.core_type<tc>, window_params = [{transform_indices = @transform_0, window_bounds = array<i64: 1, 1, 16, 128>}, {pipeline_mode = #tpu.pipeline_mode<synchronous>, transform_indices = @transform_1, window_bounds = array<i64: 384, 128>}, {pipeline_mode = #tpu.pipeline_mode<synchronous>, transform_indices = @transform_2, window_bounds = array<i64: 1, 128>}, {pipeline_mode = #tpu.pipeline_mode<synchronous>, transform_indices = @transform_3, window_bounds = array<i64: 384, 128>}, {pipeline_mode = #tpu.pipeline_mode<synchronous>, transform_indices = @transform_4, window_bounds = array<i64: 1, 128>}, {pipeline_mode = #tpu.pipeline_mode<synchronous>, transform_indices = @transform_5, window_bounds = array<i64: 128, 128>}, {transform_indices = @transform_6, window_bounds = array<i64: 1, 8, 128>}]} {
    %c0 = arith.constant 0 : index
    %c0_0 = arith.constant 0 : index
    %c0_1 = arith.constant 0 : index
    %c0_2 = arith.constant 0 : index
    %0 = vector.load %arg2[%c0, %c0_0, %c0_1, %c0_2] : memref<1x1x16x128xf32, #tpu.memory_space<vmem>>, vector<1x1x16x128xf32>
    %1 = vector.shape_cast %0 : vector<1x1x16x128xf32> to vector<16x128xf32>
    %2 = vector.extract_strided_slice %1 {offsets = [4, 0], sizes = [8, 128], strides = [1, 1]} : vector<16x128xf32> to vector<8x128xf32>
    %c0_3 = arith.constant 0 : index
    %c0_4 = arith.constant 0 : index
    %3 = vector.load %arg7[%c0_3, %c0_4] : memref<128x128xf32, #tpu.memory_space<vmem>>, vector<128x128xf32>
    %cst = arith.constant dense<0.000000e+00> : vector<8x128xf32>
    %4 = tpu.matmul %2, %3, %cst {dimension_numbers = #tpu.dot_dimension_numbers<[1], [0], [0], [1], [0, 0, 1, 1], [], []>} : vector<8x128xf32>, vector<128x128xf32>, vector<8x128xf32> -> vector<8x128xf32>
    %cst_5 = arith.constant 0.000000e+00 : f32
    %5 = vector.broadcast %cst_5 : f32 to vector<16x128xf32>
    %6 = arith.cmpf oge, %1, %5 : vector<16x128xf32>
    %cst_6 = arith.constant 2.000000e-01 : f32
    %7 = vector.broadcast %cst_6 : f32 to vector<16x128xf32>
    %8 = arith.mulf %7, %1 : vector<16x128xf32>
    %9 = arith.select %6, %1, %8 : vector<16x128xi1>, vector<16x128xf32>
    %10 = vector.extract_strided_slice %9 {offsets = [2, 0], sizes = [10, 128], strides = [1, 1]} : vector<16x128xf32> to vector<10x128xf32>
    %11 = vector.extract_strided_slice %9 {offsets = [3, 0], sizes = [10, 128], strides = [1, 1]} : vector<16x128xf32> to vector<10x128xf32>
    %12 = vector.extract_strided_slice %9 {offsets = [4, 0], sizes = [10, 128], strides = [1, 1]} : vector<16x128xf32> to vector<10x128xf32>
    %13 = tpu.concatenate %10, %11, %12 in 1 : vector<10x128xf32>, vector<10x128xf32>, vector<10x128xf32> -> vector<10x384xf32>
    %c0_7 = arith.constant 0 : index
    %c0_8 = arith.constant 0 : index
    %14 = vector.load %arg3[%c0_7, %c0_8] : memref<384x128xf32, #tpu.memory_space<vmem>>, vector<384x128xf32>
    %cst_9 = arith.constant dense<0.000000e+00> : vector<10x128xf32>
    %15 = tpu.matmul %13, %14, %cst_9 {dimension_numbers = #tpu.dot_dimension_numbers<[1], [0], [0], [1], [0, 0, 1, 1], [], []>} : vector<10x384xf32>, vector<384x128xf32>, vector<10x128xf32> -> vector<10x128xf32>
    %c0_10 = arith.constant 0 : index
    %c0_11 = arith.constant 0 : index
    %16 = vector.load %arg4[%c0_10, %c0_11] : memref<1x128xf32, #tpu.memory_space<vmem>>, vector<1x128xf32>
    %17 = vector.broadcast %16 : vector<1x128xf32> to vector<10x128xf32>
    %18 = arith.addf %15, %17 : vector<10x128xf32>
    %cst_12 = arith.constant 0.000000e+00 : f32
    %19 = vector.broadcast %cst_12 : f32 to vector<10x128xf32>
    %20 = arith.cmpf oge, %18, %19 : vector<10x128xf32>
    %cst_13 = arith.constant 2.000000e-01 : f32
    %21 = vector.broadcast %cst_13 : f32 to vector<10x128xf32>
    %22 = arith.mulf %21, %18 : vector<10x128xf32>
    %23 = arith.select %20, %18, %22 : vector<10x128xi1>, vector<10x128xf32>
    %24 = tpu.iota {dimensions = array<i32: 0>} : vector<10x1xi32>
    %c8_i32 = arith.constant 8 : i32
    %25 = arith.muli %arg1, %c8_i32 : i32
    %c1_i32 = arith.constant 1 : i32
    %26 = arith.subi %25, %c1_i32 : i32
    %27 = vector.broadcast %26 : i32 to vector<10x1xi32>
    %28 = arith.addi %24, %27 : vector<10x1xi32>
    %c0_i32 = arith.constant 0 : i32
    %29 = vector.broadcast %c0_i32 : i32 to vector<10x1xi32>
    %30 = arith.cmpi sge, %28, %29 : vector<10x1xi32>
    %c20_i32 = arith.constant 20 : i32
    %31 = vector.broadcast %c20_i32 : i32 to vector<10x1xi32>
    %32 = arith.cmpi slt, %28, %31 : vector<10x1xi32>
    %33 = arith.andi %30, %32 : vector<10x1xi1>
    %cst_14 = arith.constant 0.000000e+00 : f32
    %34 = vector.shape_cast %33 : vector<10x1xi1> to vector<10x1xi1>
    %35 = vector.broadcast %34 : vector<10x1xi1> to vector<10x128xi1>
    %36 = vector.broadcast %cst_14 : f32 to vector<10x128xf32>
    %37 = arith.select %35, %23, %36 : vector<10x128xi1>, vector<10x128xf32>
    %38 = vector.extract_strided_slice %37 {offsets = [0, 0], sizes = [8, 128], strides = [1, 1]} : vector<10x128xf32> to vector<8x128xf32>
    %39 = vector.extract_strided_slice %37 {offsets = [1, 0], sizes = [8, 128], strides = [1, 1]} : vector<10x128xf32> to vector<8x128xf32>
    %40 = vector.extract_strided_slice %37 {offsets = [2, 0], sizes = [8, 128], strides = [1, 1]} : vector<10x128xf32> to vector<8x128xf32>
    %41 = tpu.concatenate %38, %39, %40 in 1 : vector<8x128xf32>, vector<8x128xf32>, vector<8x128xf32> -> vector<8x384xf32>
    %c0_15 = arith.constant 0 : index
    %c0_16 = arith.constant 0 : index
    %42 = vector.load %arg5[%c0_15, %c0_16] : memref<384x128xf32, #tpu.memory_space<vmem>>, vector<384x128xf32>
    %cst_17 = arith.constant dense<0.000000e+00> : vector<8x128xf32>
    %43 = tpu.matmul %41, %42, %cst_17 {dimension_numbers = #tpu.dot_dimension_numbers<[1], [0], [0], [1], [0, 0, 1, 1], [], []>} : vector<8x384xf32>, vector<384x128xf32>, vector<8x128xf32> -> vector<8x128xf32>
    %c0_18 = arith.constant 0 : index
    %c0_19 = arith.constant 0 : index
    %44 = vector.load %arg6[%c0_18, %c0_19] : memref<1x128xf32, #tpu.memory_space<vmem>>, vector<1x128xf32>
    %45 = vector.broadcast %44 : vector<1x128xf32> to vector<8x128xf32>
    %46 = arith.addf %43, %45 : vector<8x128xf32>
    %47 = arith.addf %4, %46 : vector<8x128xf32>
    %cst_20 = arith.constant 0.707106769 : f32
    %48 = vector.broadcast %cst_20 : f32 to vector<8x128xf32>
    %49 = arith.mulf %47, %48 : vector<8x128xf32>
    %c0_21 = arith.constant 0 : index
    %c0_22 = arith.constant 0 : index
    %c0_23 = arith.constant 0 : index
    %50 = vector.load %arg8[%c0_21, %c0_22, %c0_23] : memref<1x8x128xf32, #tpu.memory_space<vmem>>, vector<1x8x128xf32>
    %51 = vector.shape_cast %50 : vector<1x8x128xf32> to vector<8x128xf32>
    %52 = vector.shape_cast %49 : vector<8x128xf32> to vector<1x8x128xf32>
    tpu.vector_store %arg8[%c0_21, %c0_22, %c0_23], %52 {strides = array<i32>} : memref<1x8x128xf32, #tpu.memory_space<vmem>>, vector<1x8x128xf32>,
    return
  }
  func.func @transform_0(%arg0: i32, %arg1: i32) -> (i32, i32, i32, i32) {
    %c0_i32 = arith.constant 0 : i32
    %c0_i32_0 = arith.constant 0 : i32
    %c0_i32_1 = arith.constant 0 : i32
    return %arg0, %arg1, %c0_i32, %c0_i32_0 : i32, i32, i32, i32
  }
  func.func @transform_1(%arg0: i32, %arg1: i32) -> (i32, i32) {
    %c0_i32 = arith.constant 0 : i32
    %c0_i32_0 = arith.constant 0 : i32
    %c0_i32_1 = arith.constant 0 : i32
    return %c0_i32, %c0_i32_0 : i32, i32
  }
  func.func @transform_2(%arg0: i32, %arg1: i32) -> (i32, i32) {
    %c0_i32 = arith.constant 0 : i32
    %c0_i32_0 = arith.constant 0 : i32
    %c0_i32_1 = arith.constant 0 : i32
    return %c0_i32, %c0_i32_0 : i32, i32
  }
  func.func @transform_3(%arg0: i32, %arg1: i32) -> (i32, i32) {
    %c0_i32 = arith.constant 0 : i32
    %c0_i32_0 = arith.constant 0 : i32
    %c0_i32_1 = arith.constant 0 : i32
    return %c0_i32, %c0_i32_0 : i32, i32
  }
  func.func @transform_4(%arg0: i32, %arg1: i32) -> (i32, i32) {
    %c0_i32 = arith.constant 0 : i32
    %c0_i32_0 = arith.constant 0 : i32
    %c0_i32_1 = arith.constant 0 : i32
    return %c0_i32, %c0_i32_0 : i32, i32
  }
  func.func @transform_5(%arg0: i32, %arg1: i32) -> (i32, i32) {
    %c0_i32 = arith.constant 0 : i32
    %c0_i32_0 = arith.constant 0 : i32
    %c0_i32_1 = arith.constant 0 : i32
    return %c0_i32, %c0_i32_0 : i32, i32
  }
  func.func @transform_6(%arg0: i32, %arg1: i32) -> (i32, i32, i32) {
    %c0_i32 = arith.constant 0 : i32
    %c0_i32_0 = arith.constant 0 : i32
    return %arg0, %arg1, %c0_i32 : i32, i32, i32
  }
}

</mosaic_0001>

<bundles_post_ra>
// kernel: tpu_custom_call.1
= control target key start
LH: loop header
LB: loop body
LE: loop exit
PB: predicated region body
PF: predicated region fallthrough
CT: control target
= control target key end

     0   :  { %s2348_s0 = inlined_call_operand.hbm [shape: f32[2,3,16,128], index: 0, kind: input, shape index: {}]   ;;  %s2349_s1 = inlined_call_operand.hbm [shape: f32[384,128], index: 1, kind: input, shape index: {}]   ;;  %s2350_s2 = inlined_call_operand.hbm [shape: f32[1,128], index: 2, kind: input, shape index: {}]   ;;  %s2351_s3 = inlined_call_operand.hbm [shape: f32[384,128], index: 3, kind: input, shape index: {}]   ;;  %s2352_s4 = inlined_call_operand.hbm [shape: f32[1,128], index: 4, kind: input, shape index: {}]   ;;  %s2353_s5 = inlined_call_operand.hbm [shape: f32[128,128], index: 5, kind: input, shape index: {}]   ;;  %s2354_s6 = inlined_call_operand.hbm [shape: f32[2,24,128], index: 6, kind: output, shape index: {}]  }
   0x1   :  { %2364 = sst [smem:[#allocation20_spill]] %s2349_s1 }
   0x2   :  { %2365 = sst [smem:[#allocation21_spill]] %s2350_s2 }
   0x3   :  { %2366 = sst [smem:[#allocation22_spill]] %s2351_s3 }
   0x4   :  { %2367 = sst [smem:[#allocation23_spill]] %s2352_s4 }
   0x5   :  { %2368 = sst [smem:[#allocation24_spill]] %s2354_s6 }
   0x6   :  { %11 = vsyncpa [#allocation3], 0 }
   0x7   :  { %13 = vsyncpa [#allocation3 + $0x1], 0 }
   0x8   :  { %14 = vsyncpa [#allocation6], 0 }
   0x9   :  { %15 = vsyncpa [#allocation9], 0 }
   0xa   :  { %16 = vsyncpa [#allocation12], 0 }
   0xb   :  { %17 = vsyncpa [#allocation4], 0 }
   0xc   :  { %19 = vsyncpa [#allocation4 + $0x1], 0  ;;  %s1939_s21 = smov 0   ;;  %s1941_s22 = smov 0  }
   0xd   :  { %s1943_s23 = smov 0   ;;  %s1945_s24 = smov 0  }
   0xe   :  { %s1947_s25 = smov 0   ;;  %s1949_s26 = smov 0  }
   0xf   :  { %s1951_s27 = smov 0   ;;  %s1953_s28 = smov 0  }
  0x10 LB: > { %2369 = sst [smem:[#allocation19_spill]] %s1878_s25  ;;  %s2355_s29 = sadd.s32 4294967295, %s1890_s28   ;;  %s1890_s28 = sphi %s1953_s28, %s25_s28   ;;  %s1886_s27 = sphi %s1951_s27, %s2400_s27   ;;  %s1882_s26 = sphi %s1949_s26, %s2399_s26   ;;  %s1878_s25 = sphi %s1947_s25, %s2398_s25   ;;  %s1874_s24 = sphi %s1945_s24, %s2397_s24   ;;  %s1870_s23 = sphi %s1943_s23, %s2396_s23   ;;  %s1866_s22 = sphi %s1941_s22, %s2395_s22   ;;  %s1862_s21 = sphi %s1939_s21, %s2394_s21  }
  0x11   : > { %p1070_p0 = scmp.ge.s32.totalorder %s1890_s28, 1  ;;  %p1983_p1 = scmp.eq.s32.totalorder %s2355_s29, 0 }
  0x12   : > { %p203_p2 = scmp.lt.s32.totalorder %s1890_s28, 7  ;;  %s1892_s8 = smov [#allocation5]  }
  0x13   : > { %s2370_s30 = scalar_select %p1983_p1, 1, 0 }
  0x14   : > { %p1988_p3 = pnand %p1070_p0, %p203_p2  ;;  %s215_s9 = sshll.u32 %s1892_s8, 4  ;;  %s1992_s9 = int_to_ptr.vmem [resolvable:$true] %s215_s9 }
  0x15   : > { %s1893_s11 = smov [#allocation8]   ;;  %s1894_s13 = smov [#allocation7]  }
  0x16   : > { %s2371_s7 = scalar_select %p1988_p3, 1, 0 }
  0x17   : > { %p1500_p4 = pneg %p1988_p3  ;;  %s239_s12 = sshll.u32 %s1893_s11, 4  ;;  %s2002_s12 = int_to_ptr.vmem [resolvable:$true] %s239_s12 }
  0x18   : > { %s2004_s14 = sshll.u32 %s1894_s13, 4  ;;  %s2373_s1 = sld [smem:[#allocation20_spill]]  ;;  %s230_s14 = int_to_ptr.vmem [resolvable:$true] %s2004_s14 }
  0x19   : > { %p1998_p5 = pnand %p1500_p4, %p1983_p1 }
  0x1b   : > { %p2014_p7 = pneg %p1998_p5 }
  0x1e   : > { %s1610_s17 = scalar_lea.hbm %s2373_s1, 6144 }
  0x1f   : > { %p1611_p6 = scmp.ne.s32.totalorder %s2373_s1, %s1610_s17  ;;  %p1617_p10 = scmp.lt.u32.totalorder %s1610_s17, %s2373_s1 }
  0x21   : > { %p1613_p8 = pnand %p2014_p7, %p1611_p6 }
  0x23   : > { %p1614_p9 = pneg %p1613_p8 }
  0x25   : > { %p1619_p11 = pnand %p1617_p10, %p1614_p9 }
  0x27   : > { %1622 = shalt.err (!%p1619_p11)
}
  0x28   : > { %s1623_s13 = scalar_lea.vmem %s1992_s9, 6144  ;;  %p1631_p2 = scmp.lt.s32.totalorder %s1992_s9, %s1992_s9 }
  0x29   : > { %p1624_p12 = scmp.ne.s32.totalorder %s1992_s9, %s1623_s13  ;;  %p1632_p4 = scmp.lt.s32.totalorder %s1623_s13, %s1623_s13 }
  0x2b   : > { %p1626_p13 = pnand %p1624_p12, %p2014_p7  ;;  %p1633_p6 = por %p1632_p4, %p1631_p2 }
  0x2d   : > { %p1627_p0 = pneg %p1626_p13 }
  0x2f   : > { %p1634_p8 = pnand %p1633_p6, %p1627_p0 }
  0x31   : > { %1637 = shalt.err (!%p1634_p8)
}
  0x32   : > { %s2360_s15 = smov 128   ;;  %s2362_s16 = smov 8  }
  0x33   : > { %1503 = dma.hbm_to_vmem [thread:$0]  (!%p1998_p5), %s2373_s1, 6144, %s1992_s9, [#allocation6], %s2360_s15, %s2360_s15, %s2362_s16  }
  0x34   : > { %s2375_s3 = sld [smem:[#allocation22_spill]] }
  0x3a   : > { %s1638_s11 = scalar_lea.hbm %s2375_s3, 6144 }
  0x3b   : > { %p1639_p9 = scmp.ne.s32.totalorder %s2375_s3, %s1638_s11  ;;  %p1645_p12 = scmp.lt.u32.totalorder %s1638_s11, %s2375_s3 }
  0x3d   : > { %p1641_p10 = pnand %p1639_p9, %p2014_p7 }
  0x3f   : > { %p1642_p11 = pneg %p1641_p10 }
  0x41   : > { %p1647_p13 = pnand %p1645_p12, %p1642_p11 }
  0x43   : > { %1650 = shalt.err (!%p1647_p13)
}
  0x44   : > { %s1651_s9 = scalar_lea.vmem %s2002_s12, 6144  ;;  %p1659_p6 = scmp.lt.s32.totalorder %s2002_s12, %s2002_s12 }
  0x45   : > { %p1652_p0 = scmp.ne.s32.totalorder %s2002_s12, %s1651_s9  ;;  %p1660_p8 = scmp.lt.s32.totalorder %s1651_s9, %s1651_s9 }
  0x47   : > { %p1654_p2 = pnand %p1652_p0, %p2014_p7  ;;  %p1661_p9 = por %p1660_p8, %p1659_p6 }
  0x49   : > { %p1655_p4 = pneg %p1654_p2 }
  0x4b   : > { %p1662_p10 = pnand %p1661_p9, %p1655_p4 }
  0x4d   : > { %1665 = shalt.err (!%p1662_p10)
}
  0x4e   : > { %1509 = dma.hbm_to_vmem [thread:$0]  (!%p1998_p5), %s2375_s3, 6144, %s2002_s12, [#allocation9], %s2360_s15, %s2360_s15, %s2362_s16  }
  0x4f   : > { %s2376_s2 = sld [smem:[#allocation21_spill]] }
  0x55   : > { %s1666_s18 = scalar_lea.hbm %s2376_s2, 16 }
  0x56   : > { %p1667_p11 = scmp.ne.s32.totalorder %s2376_s2, %s1666_s18  ;;  %p1673_p0 = scmp.lt.u32.totalorder %s1666_s18, %s2376_s2 }
  0x58   : > { %p1669_p12 = pnand %p1667_p11, %p2014_p7 }
  0x5a   : > { %p1670_p13 = pneg %p1669_p12 }
  0x5c   : > { %p1675_p2 = pnand %p1673_p0, %p1670_p13 }
  0x5e   : > { %1678 = shalt.err (!%p1675_p2)
}
  0x5f   : > { %s1679_s9 = scalar_lea.vmem %s230_s14, 16  ;;  %s1686_s12 = scalar_lea.vmem %s230_s14, 32 }
  0x60   : > { %p1680_p4 = scmp.ne.s32.totalorder %s230_s14, %s1679_s9  ;;  %p1687_p9 = scmp.lt.s32.totalorder %s230_s14, %s230_s14 }
  0x61   : > { %p1688_p10 = scmp.lt.s32.totalorder %s1686_s12, %s1679_s9 }
  0x62   : > { %p1682_p6 = pnand %p1680_p4, %p2014_p7 }
  0x63   : > { %p1689_p3 = por %p1688_p10, %p1687_p9 }
  0x64   : > { %p1683_p8 = pneg %p1682_p6 }
  0x66   : > { %p1690_p1 = pnand %p1689_p3, %p1683_p8 }
  0x68   : > { %1693 = shalt.err (!%p1690_p1)
}
  0x69   : > { %1506 = dma.hbm_to_vmem [thread:$0]  (!%p1998_p5), %s2376_s2, 16, %s230_s14, [#allocation6]  }
  0x6a   : > { %s1897_s29 = smov [#allocation10]   ;;  %s1898_s18 = smov [#allocation11]  }
  0x6b   : > { %s253_s17 = sshll.u32 %s1897_s29, 4  ;;  %s263_s19 = sshll.u32 %s1898_s18, 4  ;;  %s254_s17 = int_to_ptr.vmem [resolvable:$true] %s253_s17  ;;  %s264_s19 = int_to_ptr.vmem [resolvable:$true] %s263_s19 }
  0x6c   : > { %s2377_s4 = sld [smem:[#allocation23_spill]] }
  0x72   : > { %s1694_s13 = scalar_lea.hbm %s2377_s4, 16 }
  0x73   : > { %p1695_p1 = scmp.ne.s32.totalorder %s2377_s4, %s1694_s13  ;;  %p1701_p12 = scmp.lt.u32.totalorder %s1694_s13, %s2377_s4 }
  0x75   : > { %p1697_p3 = pnand %p1695_p1, %p2014_p7 }
  0x77   : > { %p1698_p11 = pneg %p1697_p3 }
  0x79   : > { %p1703_p13 = pnand %p1701_p12, %p1698_p11 }
  0x7b   : > { %1706 = shalt.err (!%p1703_p13)
}
  0x7c   : > { %s1707_s14 = scalar_lea.vmem %s254_s17, 16  ;;  %s1714_s25 = scalar_lea.vmem %s254_s17, 32 }
  0x7d   : > { %p1708_p0 = scmp.ne.s32.totalorder %s254_s17, %s1707_s14  ;;  %p1715_p6 = scmp.lt.s32.totalorder %s254_s17, %s254_s17 }
  0x7e   : > { %p1716_p8 = scmp.lt.s32.totalorder %s1714_s25, %s1707_s14 }
  0x7f   : > { %p1710_p2 = pnand %p1708_p0, %p2014_p7 }
  0x80   : > { %p1717_p9 = por %p1716_p8, %p1715_p6 }
  0x81   : > { %p1711_p4 = pneg %p1710_p2 }
  0x83   : > { %p1718_p10 = pnand %p1717_p9, %p1711_p4 }
  0x85   : > { %1721 = shalt.err (!%p1718_p10)
}
  0x86   : > { %1512 = dma.hbm_to_vmem [thread:$0]  (!%p1998_p5), %s2377_s4, 16, %s254_s17, [#allocation9]  }
  0x87   : > { %s1722_s11 = scalar_lea.hbm %s2353_s5, 2048 }
  0x88   : > { %p1723_p1 = scmp.ne.s32.totalorder %s2353_s5, %s1722_s11  ;;  %p1729_p12 = scmp.lt.u32.totalorder %s1722_s11, %s2353_s5 }
  0x8a   : > { %p1725_p3 = pnand %p1723_p1, %p2014_p7 }
  0x8c   : > { %p1726_p11 = pneg %p1725_p3 }
  0x8e   : > { %p1731_p13 = pnand %p1729_p12, %p1726_p11 }
  0x90   : > { %1734 = shalt.err (!%p1731_p13)
}
  0x91   : > { %s1735_s14 = scalar_lea.vmem %s264_s19, 2048  ;;  %p1743_p6 = scmp.lt.s32.totalorder %s264_s19, %s264_s19 }
  0x92   : > { %p1736_p0 = scmp.ne.s32.totalorder %s264_s19, %s1735_s14  ;;  %p1744_p8 = scmp.lt.s32.totalorder %s1735_s14, %s1735_s14 }
  0x94   : > { %p1738_p2 = pnand %p1736_p0, %p2014_p7  ;;  %p1745_p9 = por %p1744_p8, %p1743_p6 }
  0x96   : > { %p1739_p4 = pneg %p1738_p2 }
  0x98   : > { %p1746_p10 = pnand %p1745_p9, %p1739_p4 }
  0x9a   : > { %1749 = shalt.err (!%p1746_p10)
}
  0x9b   : > { %s2378_s17 = smov 128   ;;  %s1069_s10 = sadd.s32 4294967294, %s1890_s28  }
  0x9c   : > { %1515 = dma.hbm_to_vmem [thread:$0]  (!%p1998_p5), %s2353_s5, 2048, %s264_s19, [#allocation12], %s2378_s17, %s2378_s17, %s2362_s16  }
  0x9d   : > { %s34_s20 = sadd.s32 1, %s1882_s26  ;;  %s37_s18 = sadd.s32 1, %s1886_s27 }
  0x9e   : > { %p35_p7 = scmp.ge.s32.totalorder %s34_s20, 3  ;;  %s46_s15 = sadd.s32 1, %s1870_s23 }
  0x9f   : > { %p53_p1 = scmp.ne.s32.totalorder %s1870_s23, %s1866_s22  ;;  %p54_p5 = scmp.eq.s32.totalorder %s1890_s28, 0 }
  0xa0   : > { %s2402_s20 = smov (%p35_p7, %s34_s20), 0  ;;  %s2404_s18 = smov (!%p35_p7, %s37_s18), %s1886_s27 }
  0xa1   : > { %s42_s8 = ssub.s32 %s1882_s26, %s2402_s20  ;;  %p39_p3 = scmp.ge.s32.totalorder %s2404_s18, 2 }
  0xa2   : > { %p59_p11 = scmp.ne.s32.totalorder %s1866_s22, %s1862_s21  ;;  %s2379_s19 = sadd.s32 4294967295, %s1890_s28  }
  0xa3   : > { %p190_p12 = scmp.eq.s32.totalorder %s2379_s19, 5  ;;  %p196_p13 = scmp.eq.s32.totalorder %s1069_s10, 5 }
  0xa4   : > { %s2406_s18 = smov (%p39_p3, %s2404_s18), 0  ;;  %p2380_p0 = scmp.ne.s32.totalorder %s2370_s30, 0 }
  0xa5   : > { %p2149_p4 = por %p190_p12, %p53_p1  ;;  %s41_s9 = ssub.s32 %s1886_s27, %s2406_s18 }
  0xa6   : > { %p2142_p2 = por %p2380_p0, %p59_p11  ;;  %p2155_p6 = por %p196_p13, %p59_p11 }
  0xa7   : > { %s2382_s13 = scalar_select %p2149_p4, 1, 0 }
  0xa8   : > { %s2383_s12 = scalar_select %p2155_p6, 1, 0 }
  0xa9   : > { %s43_s6 = sor.u32 %s42_s8, %s41_s9  ;;  %p55_p8 = por %p54_p5, %p53_p1 }
  0xaa   : > { %p44_p9 = scmp.eq.s32.totalorder %s43_s6, 0  ;;  %s277_s14 = sand.u32 1, %s1870_s23  }
  0xab   : > { %p1529_p10 = scmp.lt.s32.totalorder %s1890_s28, 6  ;;  %s1077_s25 = sshll.u32 %s277_s14, 4 }
  0xac   : > { %s2165_s29 = scalar_select %p44_p9, %s1870_s23, %s46_s15  }
  0xad   : > { %s1078_s10 = sshll.u32 %s1882_s26, 1  ;;  %s1474_s19 = smul.u32 6, %s1886_s27 }
  0xae   : > { %s281_s16 = scalar_lea.vmem [#allocation2], %s1077_s25  ;;  %p2169_p7 = pnand %p1529_p10, %p55_p8 }
  0xaf   : > { %s290_s1 = sshll.u32 %s281_s16, 4  ;;  %s287_s3 = sadd.s32 %s1474_s19, %s1078_s10  ;;  %s2173_s1 = int_to_ptr.vmem [resolvable:$true] %s290_s1 }
  0xb0   : > { %s1079_s8 = sshll.u32 %s287_s3, 7  ;;  %s2180_s16 = scalar_lea.sflag [#allocation3], %s277_s14 }
  0xb1   : > { %s2178_s4 = scalar_lea.hbm %s2348_s0, %s1079_s8  ;;  %p1752_p5 = pneg %p2169_p7 }
  0xb2   : > { %s1750_s15 = scalar_lea.hbm %s2178_s4, 256  ;;  %s1755_s10 = scalar_lea.hbm %s2348_s0, 1536 }
  0xb3   : > { %p1751_p1 = scmp.ne.s32.totalorder %s2178_s4, %s1750_s15  ;;  %p1756_p12 = scmp.lt.u32.totalorder %s2178_s4, %s2348_s0 }
  0xb4   : > { %p1757_p13 = scmp.lt.u32.totalorder %s1755_s10, %s1750_s15  ;;  %p1759_p8 = scmp.lt.u32.totalorder %s1750_s15, %s2178_s4 }
  0xb5   : > { %p1753_p3 = pnand %p1752_p5, %p1751_p1 }
  0xb6   : > { %p1758_p0 = por %p1757_p13, %p1756_p12 }
  0xb7   : > { %p1754_p11 = pneg %p1753_p3 }
  0xb8   : > { %p1760_p9 = por %p1759_p8, %p1758_p0 }
  0xba   : > { %p1761_p10 = pnand %p1760_p9, %p1754_p11 }
  0xbc   : > { %1764 = shalt.err (!%p1761_p10)
}
  0xbd   : > { %s1765_s14 = scalar_lea.vmem %s2173_s1, 256  ;;  %s1899_s9 = smov [#allocation2]  }
  0xbe   : > { %p1766_p1 = scmp.ne.s32.totalorder %s2173_s1, %s1765_s14  ;;  %s1770_s6 = sshll.u32 %s1899_s9, 4  ;;  %s1771_s6 = int_to_ptr.vmem [resolvable:$false] %s1770_s6 }
  0xbf   : > { %s1772_s3 = scalar_lea.vmem %s1771_s6, 512  ;;  %p1773_p4 = scmp.lt.s32.totalorder %s2173_s1, %s1771_s6 }
  0xc0   : > { %p1768_p3 = pnand %p1766_p1, %p1752_p5  ;;  %p1774_p12 = scmp.lt.s32.totalorder %s1772_s3, %s1765_s14 }
  0xc2   : > { %p1769_p6 = pneg %p1768_p3  ;;  %p1775_p13 = por %p1774_p12, %p1773_p4 }
  0xc4   : > { %p1776_p0 = pnand %p1775_p13, %p1769_p6 }
  0xc6   : > { %1779 = shalt.err (!%p1776_p0)
}
  0xc7   : > { %s2385_s15 = smov 8   ;;  %p2386_p5 = scmp.ne.s32.totalorder %s2371_s7, 0 }
  0xc8   : > { %1519 = dma.hbm_to_vmem [thread:$0]  (!%p2169_p7), %s2178_s4, 256, %s2173_s1, %s2180_s16, %s2378_s17, %s2378_s17, %s2385_s15  }
  0xc9   : > { %302 = sbr.rel (%p2386_p5) target bundleno = 743 (0x2e7), region = 44  ;;  %s2214_s25 = sand.u32 (!%p2386_p5), 1, %s1866_s22  }
  0xca   : > { %s1081_s10 = sshll.u32 (!%p2386_p5), %s2214_s25, 4  ;;  %s305_s19 = scalar_lea.sflag (!%p2386_p5), [#allocation3], %s2214_s25 }
  0xcb   : > { %s2218_s8 = scalar_lea.vmem (!%p2386_p5), [#allocation2], %s1081_s10 }
  0xd0   : > { %1841 = dma.done.wait (%p2142_p2), %s305_s19, 256  }
  0xd1   : > { %1843 = vsyncadd (%p2142_p2), %s305_s19, 4294967040  ;;  %p2387_p4 = scmp.ne.s32.totalorder %s2370_s30, 0 }
  0xd3   : > { %1845 = dma.done.wait (%p2387_p4), [#allocation6], 6160  }
  0xd4   : > { %1847 = vsyncadd (%p2387_p4), [#allocation6], 4294961136 }
  0xd5   : > { %1849 = dma.done.wait (%p2387_p4), [#allocation9], 6160  }
  0xd6   : > { %1851 = vsyncadd (%p2387_p4), [#allocation9], 4294961136 }
  0xd7   : > { %1853 = dma.done.wait (%p2387_p4), [#allocation12], 2048  }
  0xd8   : > { %1855 = vsyncadd (%p2387_p4), [#allocation12], 4294965248  ;;  %v407_v0 = vld [vmem:[#allocation5 + $0x80] sm:$0xff]  ;;  %v408_v1 = vld [vmem:[#allocation5 + $0x88] sm:$0xff]  ;;  %vm383_vm2 = vcmask 1046528   ;;  %vm387_vm3 = vcmask 1045504  }
  0xd9   : > { %v391_v2 = vld [vmem:[#allocation5] sm:$0xff]  ;;  %v1327_v3 = vpack.c.bf16 %v408_v1, %v407_v0  ;;  %v392_v4 = vld [vmem:[#allocation5 + $0x8] sm:$0xff]  ;;  %v409_v5 = vld [vmem:[#allocation5 + $0x90] sm:$0xff]  ;;  %vm1901_vm4 = vmmov 0   ;;  %s1089_s1 = sshll.u32 %s1874_s24, 3  ;;  %s2390_s4 = sld [smem:[#allocation19_spill]] }
  0xda   : > { %v410_v6 = vld [vmem:[#allocation5 + $0x98] sm:$0xff]  ;;  %v1329_v7 = vpack.c.bf16 %v392_v4, %v391_v2  ;;  %v423_v9 = vld [vmem:[#allocation5 + $0x100] sm:$0xff]  ;;  %v424_v10 = vld [vmem:[#allocation5 + $0x108] sm:$0xff]  ;;  %s1090_s2 = sadd.s32 4294967295, %s1089_s1  ;;  %vm841_vm13 = vcmask 1043456   ;;  %s1087_s7 = sshll.u32 %s2214_s25, 3 }
  0xdb   : > { %v1331_v8 = vpack.c.bf16 %v410_v6, %v409_v5  ;;  %v393_v11 = vld [vmem:[#allocation5 + $0x10] sm:$0xff]  ;;  %1328 = vmatprep.subr.bf16.mxu0 %v1327_v3  ;;  %v1359_v12 = vpack.c.bf16 %v424_v10, %v423_v9  ;;  %v394_v13 = vld [vmem:[#allocation5 + $0x18] sm:$0xff]  ;;  %v411_v14 = vld [vmem:[#allocation5 + $0xa0] sm:$0xff]  ;;  %s356_s16 = scalar_lea.vmem [#allocation13], %s1087_s7  ;;  %s2391_s3 = sld [smem:[#allocation24_spill]] }
  0xdc   : > { %v412_v15 = vld [vmem:[#allocation5 + $0xa8] sm:$0xff]  ;;  %1330 = vmatpush3.bf16.msra.mxu0 %v1329_v7  ;;  %v1333_v16 = vpack.c.bf16 %v394_v13, %v393_v11  ;;  %v425_v17 = vld [vmem:[#allocation5 + $0x110] sm:$0xff]  ;;  %v426_v18 = vld [vmem:[#allocation5 + $0x118] sm:$0xff]  ;;  %s934_s14 = sshll.u32 %s356_s16, 4  ;;  %p2392_p6 = scmp.ne.s32.totalorder %s2382_s13, 0  ;;  %s2296_s14 = int_to_ptr.vmem [resolvable:$true] %s934_s14 }
  0xdd   : > { %1332 = vmatprep.subr.bf16.mxu0 %v1331_v8  ;;  %1360 = vmatprep.subr.bf16.mxu1 %v1359_v12  ;;  %v1335_v19 = vpack.c.bf16 %v412_v15, %v411_v14  ;;  %v1363_v20 = vpack.c.bf16 %v426_v18, %v425_v17  ;;  %v395_v21 = vld [vmem:[#allocation5 + $0x20] sm:$0xff]  ;;  %v396_v22 = vld [vmem:[#allocation5 + $0x28] sm:$0xff]  ;;  %v413_v23 = vld [vmem:[#allocation5 + $0xb0] sm:$0xff]  ;;  %s1780_s10 = scalar_lea.vmem %s2296_s14, 128  ;;  %s1903_s19 = smov [#allocation13]  }
  0xde   : > { %1362 = vmatpush3.bf16.msra.mxu1 %v1359_v12  ;;  %v414_v24 = vld [vmem:[#allocation5 + $0xb8] sm:$0xff]  ;;  %v427_v25 = vld [vmem:[#allocation5 + $0x120] sm:$0xff]  ;;  %v428_v26 = vld [vmem:[#allocation5 + $0x128] sm:$0xff]  ;;  %v1337_v28 = vpack.c.bf16 %v396_v22, %v395_v21  ;;  %p1781_p2 = scmp.ne.s32.totalorder %s2296_s14, %s1780_s10 }
  0xdf   : > { %1364 = vmatprep.subr.bf16.mxu1 %v1363_v20  ;;  %v1367_v27 = vpack.c.bf16 %v428_v26, %v427_v25  ;;  %v429_v29 = vld [vmem:[#allocation5 + $0x130] sm:$0xff]  ;;  %v430_v30 = vld [vmem:[#allocation5 + $0x138] sm:$0xff]  ;;  %v1339_v31 = vpack.c.bf16 %v414_v24, %v413_v23  ;;  %v415_v34 = vld [vmem:[#allocation5 + $0xc0] sm:$0xff]  ;;  %s1475_s30 = smul.u32 3, %s2390_s4 }
  0xe0   : > { %1334 = vmatpush3.bf16.msra.mxu0 %v1333_v16  ;;  %v397_v32 = vld [vmem:[#allocation5 + $0x30] sm:$0xff]  ;;  %v398_v33 = vld [vmem:[#allocation5 + $0x38] sm:$0xff]  ;;  %v416_v35 = vld [vmem:[#allocation5 + $0xc8] sm:$0xff]  ;;  %v1371_v36 = vpack.c.bf16 %v430_v30, %v429_v29  ;;  %p1782_p7 = pnand %p1781_p2, %p2392_p6 }
  0xe1   : > { %1336 = vmatprep.subr.bf16.mxu0 %v1335_v19  ;;  %v1341_v37 = vpack.c.bf16 %v398_v33, %v397_v32  ;;  %v431_v38 = vld [vmem:[#allocation5 + $0x140] sm:$0xff]  ;;  %v432_v39 = vld [vmem:[#allocation5 + $0x148] sm:$0xff]  ;;  %v1343_v40 = vpack.c.bf16 %v416_v35, %v415_v34  ;;  %v417_v43 = vld [vmem:[#allocation5 + $0xd0] sm:$0xff]  ;;  %s930_s17 = sadd.s32 %s1874_s24, %s1475_s30  ;;  %s919_s24 = scalar_lea.sflag [#allocation4], %s2214_s25 }
  0xe2   : > { %1366 = vmatpush3.bf16.msra.mxu1 %v1363_v20  ;;  %v399_v41 = vld [vmem:[#allocation5 + $0x40] sm:$0xff]  ;;  %v400_v42 = vld [vmem:[#allocation5 + $0x48] sm:$0xff]  ;;  %v418_v44 = vld [vmem:[#allocation5 + $0xd8] sm:$0xff]  ;;  %v1375_v45 = vpack.c.bf16 %v432_v39, %v431_v38  ;;  %s1094_s11 = sshll.u32 %s930_s17, 7  ;;  %p1783_p11 = pneg %p1782_p7 }
  0xe3   : > { %1368 = vmatprep.subr.bf16.mxu1 %v1367_v27  ;;  %v2237_v46 = vld [vmem:[%s2218_s8] sm:$0xff]  ;;  %v2240_v47 = vld [vmem:[%s2218_s8 + $0x8] sm:$0xff]  ;;  %v1345_v48 = vpack.c.bf16 %v400_v42, %v399_v41  ;;  %v1347_v52 = vpack.c.bf16 %v418_v44, %v417_v43  ;;  %v1900_v42 = vmov 0.0|0.0   ;;  %s2294_s15 = scalar_lea.hbm %s2391_s3, %s1094_s11  ;;  %s1784_s8 = sshll.u32 %s1903_s19, 4  ;;  %s1785_s8 = int_to_ptr.vmem [resolvable:$false] %s1784_s8 }
  0xe4   : > { %1338 = vmatpush3.bf16.msra.mxu0 %v1337_v28  ;;  %v433_v49 = vld [vmem:[#allocation5 + $0x150] sm:$0xff]  ;;  %v434_v50 = vld [vmem:[#allocation5 + $0x158] sm:$0xff]  ;;  %vm375_vm0 = vcmp.ge.f32.partialorder %v2237_v46, 0.0  ;;  %vm376_vm1 = vcmp.ge.f32.partialorder %v2240_v47, 0.0  ;;  %v377_v51 = vmul.f32 0.2, %v2237_v46  ;;  %p1787_p8 = scmp.lt.s32.totalorder %s2296_s14, %s1785_s8 }
  0xe5   : > { %1340 = vmatprep.subr.bf16.mxu0 %v1339_v31  ;;  %v401_v53 = vld [vmem:[#allocation5 + $0x50] sm:$0xff]  ;;  %v402_v54 = vld [vmem:[#allocation5 + $0x58] sm:$0xff]  ;;  %v378_v55 = vmul.f32 0.2, %v2240_v47  ;;  %v419_v56 = vld [vmem:[#allocation5 + $0xe0] sm:$0xff]  ;;  %v1379_v59 = vpack.c.bf16 %v434_v50, %v433_v49  ;;  %s1786_s1 = scalar_lea.vmem %s1785_s8, 256 }
  0xe6   : > { %1370 = vmatpush3.bf16.msra.mxu1 %v1367_v27  ;;  %v420_v57 = vld [vmem:[#allocation5 + $0xe8] sm:$0xff]  ;;  %v379_v58 = vsel %vm375_vm0, %v2237_v46, %v377_v51  ;;  %v1349_v63 = vpack.c.bf16 %v402_v54, %v401_v53  ;;  %v435_v0 = vld [vmem:[#allocation5 + $0x160] sm:$0xff]  ;;  %v421_v7 = vld [vmem:[#allocation5 + $0xf0] sm:$0xff]  ;;  %p1788_p9 = scmp.lt.s32.totalorder %s1786_s1, %s1780_s10 }
  0xe7   : > { %1372 = vmatprep.subr.bf16.mxu1 %v1371_v36  ;;  %v380_v60 = vsel %vm376_vm1, %v2240_v47, %v378_v55  ;;  %v384_v61 = vrot.slane %v379_v58, 1  ;;  %v388_v62 = vrot.slane %v379_v58, 2  ;;  %v436_v1 = vld [vmem:[#allocation5 + $0x168] sm:$0xff]  ;;  %v1351_v4 = vpack.c.bf16 %v420_v57, %v419_v56  ;;  %v403_v5 = vld [vmem:[#allocation5 + $0x60] sm:$0xff]  ;;  %v422_v8 = vld [vmem:[#allocation5 + $0xf8] sm:$0xff] }
  0xe8   : > { %1342 = vmatpush3.bf16.msra.mxu0 %v1341_v37  ;;  %v385_v2 = vrot.slane %v380_v60, 1  ;;  %v2248_v3 = vrot.slane %v380_v60, 2  ;;  %v404_v6 = vld [vmem:[#allocation5 + $0x68] sm:$0xff]  ;;  %v1383_v13 = vpack.c.bf16 %v436_v1, %v435_v0  ;;  %v437_v17 = vld [vmem:[#allocation5 + $0x170] sm:$0xff]  ;;  %v438_v18 = vld [vmem:[#allocation5 + $0x178] sm:$0xff]  ;;  %v1355_v19 = vpack.c.bf16 %v422_v8, %v421_v7  ;;  %p1789_p10 = por %p1788_p9, %p1787_p8 }
  0xe9   : > { %1344 = vmatprep.subr.bf16.mxu0 %v1343_v40  ;;  %v1353_v16 = vpack.c.bf16 %v404_v6, %v403_v5  ;;  %v405_v20 = vld [vmem:[#allocation5 + $0x70] sm:$0xff]  ;;  %v406_v21 = vld [vmem:[#allocation5 + $0x78] sm:$0xff]  ;;  %v660_v24 = vld [vmem:[#allocation8 + $0x80] sm:$0xff]  ;;  %v1387_v26 = vpack.c.bf16 %v438_v18, %v437_v17 }
  0xea   : > { %1374 = vmatpush3.bf16.msra.mxu1 %v1371_v36  ;;  %v386_v9 = vsel %vm383_vm2, %v384_v61, %v385_v2  ;;  %v447_v10 = vrot.slane %v385_v2, 2  ;;  %v390_v11 = vsel %vm387_vm3, %v388_v62, %v2248_v3  ;;  %v450_v12 = vrot.slane %v2248_v3, 2  ;;  %v661_v25 = vld [vmem:[#allocation8 + $0x88] sm:$0xff]  ;;  %v644_v29 = vld [vmem:[#allocation8] sm:$0xff]  ;;  %v662_v31 = vld [vmem:[#allocation8 + $0x90] sm:$0xff]  ;;  %p1790_p1 = pnand %p1789_p10, %p1783_p11 }
  0xeb   : > { %1376 = vmatprep.subr.bf16.mxu1 %v1375_v45  ;;  %v446_v14 = vrot.slane %v386_v9, 2  ;;  %v449_v15 = vrot.slane %v390_v11, 2  ;;  %v1357_v27 = vpack.c.bf16 %v406_v21, %v405_v20  ;;  %v1391_v28 = vpack.c.bf16 %v661_v25, %v660_v24  ;;  %v645_v30 = vld [vmem:[#allocation8 + $0x8] sm:$0xff]  ;;  %v663_v32 = vld [vmem:[#allocation8 + $0x98] sm:$0xff]  ;;  %v676_v33 = vld [vmem:[#allocation8 + $0x100] sm:$0xff] }
  0xec   : > { %1346 = vmatpush3.bf16.msra.mxu0 %v1345_v48  ;;  %v677_v34 = vld [vmem:[#allocation8 + $0x108] sm:$0xff]  ;;  %v1393_v35 = vpack.c.bf16 %v645_v30, %v644_v29  ;;  %v1395_v36 = vpack.c.bf16 %v663_v32, %v662_v31  ;;  %v646_v37 = vld [vmem:[#allocation8 + $0x10] sm:$0xff]  ;;  %v647_v38 = vld [vmem:[#allocation8 + $0x18] sm:$0xff] }
  0xed   : > { %1348 = vmatprep.subr.bf16.mxu0 %v1347_v52  ;;  %v448_v22 = vsel %vm387_vm3, %v446_v14, %v447_v10  ;;  %v451_v23 = vsel %vm387_vm3, %v449_v15, %v450_v12  ;;  %v1424_v39 = vpack.c.bf16 %v677_v34, %v676_v33  ;;  %v664_v40 = vld [vmem:[#allocation8 + $0xa0] sm:$0xff]  ;;  %v665_v41 = vld [vmem:[#allocation8 + $0xa8] sm:$0xff]  ;;  %v678_v43 = vld [vmem:[#allocation8 + $0x110] sm:$0xff] }
  0xee   : > { %1378 = vmatpush3.bf16.msra.mxu1 %v1375_v45  ;;  %522 = vmatprep.mubr.f32.mxu0 %v448_v22  ;;  %v679_v44 = vld [vmem:[#allocation8 + $0x118] sm:$0xff]  ;;  %v1397_v45 = vpack.c.bf16 %v647_v38, %v646_v37  ;;  %v1399_v48 = vpack.c.bf16 %v665_v41, %v664_v40  ;;  %v648_v49 = vld [vmem:[#allocation8 + $0x20] sm:$0xff]  ;;  %v649_v50 = vld [vmem:[#allocation8 + $0x28] sm:$0xff]  ;;  %v614_v38 = vlaneseq  ;;  %v619_v41 = vstv %s1090_s2 }
  0xef   : > { %1380 = vmatprep.subr.bf16.mxu1 %v1379_v59  ;;  %1254 = vmatprep.mubr.f32.mxu1 %v451_v23  ;;  %v1427_v51 = vpack.c.bf16 %v679_v44, %v678_v43  ;;  %v680_v52 = vld [vmem:[#allocation8 + $0x120] sm:$0xff]  ;;  %v681_v53 = vld [vmem:[#allocation8 + $0x128] sm:$0xff]  ;;  %v1401_v54 = vpack.c.bf16 %v649_v50, %v648_v49  ;;  %v682_v56 = vld [vmem:[#allocation8 + $0x130] sm:$0xff] }
  0xf0   : > { %1350 = vmatpush3.bf16.msra.mxu0 %v1349_v63  ;;  %v1430_v55 = vpack.c.bf16 %v681_v53, %v680_v52  ;;  %v683_v57 = vld [vmem:[#allocation8 + $0x138] sm:$0xff]  ;;  %v650_v62 = vld [vmem:[#allocation8 + $0x30] sm:$0xff]  ;;  %v684_v1 = vld [vmem:[#allocation8 + $0x140] sm:$0xff] }
  0xf1   : > { %1352 = vmatprep.subr.bf16.mxu0 %v1351_v4  ;;  %v1433_v58 = vpack.c.bf16 %v683_v57, %v682_v56  ;;  %v667_v60 = vld [vmem:[#allocation8 + $0xb8] sm:$0xff]  ;;  %v685_v2 = vld [vmem:[#allocation8 + $0x148] sm:$0xff]  ;;  %v668_v4 = vld [vmem:[#allocation8 + $0xc0] sm:$0xff] }
  0xf2   : > { %1382 = vmatpush3.bf16.msra.mxu1 %v1379_v59  ;;  %v666_v59 = vld [vmem:[#allocation8 + $0xb0] sm:$0xff]  ;;  %v651_v63 = vld [vmem:[#allocation8 + $0x38] sm:$0xff]  ;;  %v669_v5 = vld [vmem:[#allocation8 + $0xc8] sm:$0xff] }
  0xf3   : > { %1384 = vmatprep.subr.bf16.mxu1 %v1383_v13  ;;  %v1403_v61 = vpack.c.bf16 %v667_v60, %v666_v59  ;;  %v1405_v0 = vpack.c.bf16 %v651_v63, %v650_v62  ;;  %v1407_v6 = vpack.c.bf16 %v669_v5, %v668_v4  ;;  %v652_v7 = vld [vmem:[#allocation8 + $0x40] sm:$0xff]  ;;  %v653_v8 = vld [vmem:[#allocation8 + $0x48] sm:$0xff]  ;;  %v671_v14 = vld [vmem:[#allocation8 + $0xd8] sm:$0xff] }
  0xf4   : > { %1354 = vmatpush3.bf16.msra.mxu0 %v1353_v16  ;;  %v1409_v9 = vpack.c.bf16 %v653_v8, %v652_v7  ;;  %v654_v16 = vld [vmem:[#allocation8 + $0x50] sm:$0xff]  ;;  %v655_v17 = vld [vmem:[#allocation8 + $0x58] sm:$0xff]  ;;  %v689_v20 = vld [vmem:[#allocation8 + $0x168] sm:$0xff] }
  0xf5   : > { %1356 = vmatprep.subr.bf16.mxu0 %v1355_v19  ;;  %v1413_v18 = vpack.c.bf16 %v655_v17, %v654_v16  ;;  %v688_v19 = vld [vmem:[#allocation8 + $0x160] sm:$0xff]  ;;  %v673_v23 = vld [vmem:[#allocation8 + $0xe8] sm:$0xff]  ;;  %v691_v29 = vld [vmem:[#allocation8 + $0x178] sm:$0xff] }
  0xf6   : > { %1386 = vmatpush3.bf16.msra.mxu1 %v1383_v13  ;;  %v670_v13 = vld [vmem:[#allocation8 + $0xd0] sm:$0xff]  ;;  %v1442_v21 = vpack.c.bf16 %v689_v20, %v688_v19  ;;  %v672_v22 = vld [vmem:[#allocation8 + $0xe0] sm:$0xff]  ;;  %v675_v32 = vld [vmem:[#allocation8 + $0xf8] sm:$0xff] }
  0xf7   : > { %1388 = vmatprep.subr.bf16.mxu1 %v1387_v26  ;;  %v1411_v15 = vpack.c.bf16 %v671_v14, %v670_v13  ;;  %v1415_v24 = vpack.c.bf16 %v673_v23, %v672_v22  ;;  %v656_v25 = vld [vmem:[#allocation8 + $0x60] sm:$0xff]  ;;  %v674_v30 = vld [vmem:[#allocation8 + $0xf0] sm:$0xff]  ;;  %v659_v34 = vld [vmem:[#allocation8 + $0x78] sm:$0xff] }
  0xf8   : > { %1358 = vmatpush3.bf16.msra.mxu0 %v1357_v27  ;;  %v658_v33 = vld [vmem:[#allocation8 + $0x70] sm:$0xff]  ;;  %v1088_v44 = vld [vmem:[#allocation7] ss:$0 sm:$0xff] }
  0xf9   : > { %1392 = vmatprep.subr.bf16.mxu0 %v1391_v28  ;;  %v690_v28 = vld [vmem:[#allocation8 + $0x170] sm:$0xff]  ;;  %v1421_v37 = vpack.c.bf16 %v659_v34, %v658_v33  ;;  %v366_v19 = vld [vmem:[#allocation11 + $0x38] sm:$0xff]  ;;  %v842_v33 = vrot.slane %v2237_v46, 4  ;;  %v843_v34 = vrot.slane %v2240_v47, 4 }
  0xfa   : > { %1390 = vmatpush3.bf16.msra.mxu1 %v1387_v26  ;;  %v657_v26 = vld [vmem:[#allocation8 + $0x68] sm:$0xff]  ;;  %v1445_v31 = vpack.c.bf16 %v691_v29, %v690_v28 }
  0xfb   : > { %523 = vmatmul.mubr.f32.vlgmr.msra.gmra.mrb[0].mxu0 %v390_v11  ;;  %1423 = vmatprep.subr.bf16.mxu1 %v1900_v42  ;;  %v687_v11 = vld [vmem:[#allocation8 + $0x158] sm:$0xff]  ;;  %v1417_v27 = vpack.c.bf16 %v657_v26, %v656_v25  ;;  %v364_v16 = vld [vmem:[#allocation11 + $0x28] sm:$0xff] }
  0xfc   : > { %527 = vmatprep.mubr.f32.mxu0 %v447_v10  ;;  %1394 = vmatpush3.bf16.msra.mxu0 %v1393_v35  ;;  %v686_v10 = vld [vmem:[#allocation8 + $0x150] sm:$0xff]  ;;  %v1902_v35 = vmov 0.0   ;;  %v370_v25 = vld [vmem:[#allocation11 + $0x58] sm:$0xff] }
  0xfd   : > { %1255 = vmatmul.mubr.f32.vlgmr.msra.gmra.mrb[0].mxu1 %v450_v12  ;;  %1396 = vmatprep.subr.bf16.mxu0 %v1395_v36  ;;  %v1439_v12 = vpack.c.bf16 %v687_v11, %v686_v10  ;;  %v1419_v36 = vpack.c.bf16 %v675_v32, %v674_v30  ;;  %v361_v10 = vld [vmem:[#allocation11 + $0x10] sm:$0xff]  ;;  %v362_v11 = vld [vmem:[#allocation11 + $0x18] sm:$0xff]  ;;  %v368_v22 = vld [vmem:[#allocation11 + $0x48] sm:$0xff] }
  0xfe   : > { %1425 = vmatpush3.bf16.msra.mxu1 %v1424_v39  ;;  %1289 = vmatprep.mubr.msk.f32.mxu1 %vm1901_vm4, %v1902_v35  ;;  %v615_v39 = vshrl.u32 %v614_v38, 7  ;;  %v1451_v14 = vpack.c.bf16 %v362_v11, %v361_v10  ;;  %v372_v28 = vld [vmem:[#allocation11 + $0x68] sm:$0xff]  ;;  %v373_v30 = vld [vmem:[#allocation11 + $0x70] sm:$0xff] }
  0xff   : > { %528 = vmatmul.mubr.f32.gmra.mrb[2].mxu0 %v2248_v3  ;;  %1426 = vmatprep.subr.bf16.mxu1 %v1900_v42  ;;  %v1436_v3 = vpack.c.bf16 %v685_v2, %v684_v1  ;;  %v360_v1 = vld [vmem:[#allocation11 + $0x8] sm:$0xff] }
 0x100   : > { %1398 = vmatpush3.bf16.msra.mxu0 %v1397_v45  ;;  %v616_v45 = vadd.s32 8, %v615_v39 }
 0x101   : > { %1400 = vmatprep.subr.bf16.mxu0 %v1399_v48 }
 0x102   : > { %1428 = vmatpush3.bf16.msra.mxu1 %v1427_v51  ;;  %v620_v51 = vadd.s32 %v619_v41, %v615_v39  ;;  %v1091_v39 = vld [vmem:[#allocation10] ss:$0 sm:$0xff] }
 0x103   : > { %1429 = vmatprep.subr.bf16.mxu1 %v1900_v42 }
 0x104   : > { %1402 = vmatpush3.bf16.msra.mxu0 %v1401_v54  ;;  %vm622_vm5 = vcmp.ge.s32.totalorder %v620_v51, 0  ;;  %vm624_vm6 = vcmp.lt.s32.totalorder %v620_v51, 20 }
 0x105   : > { %1404 = vmatprep.subr.bf16.mxu0 %v1403_v61  ;;  %vm2268_vm10 = vmand %vm622_vm5, %vm624_vm6 }
 0x106   : > { %1431 = vmatpush3.bf16.msra.mxu1 %v1430_v55  ;;  %v621_v55 = vadd.s32 %v619_v41, %v616_v45 }
 0x107   : > { %1432 = vmatprep.subr.bf16.mxu1 %v1900_v42 }
 0x108   : > { %1406 = vmatpush3.bf16.msra.mxu0 %v1405_v0  ;;  %vm623_vm8 = vcmp.ge.s32.totalorder %v621_v55, 0  ;;  %vm625_vm9 = vcmp.lt.s32.totalorder %v621_v55, 20  ;;  %v359_v0 = vld [vmem:[#allocation11] sm:$0xff] }
 0x109   : > { %1408 = vmatprep.subr.bf16.mxu0 %v1407_v6  ;;  %vm627_vm12 = vmand %vm623_vm8, %vm625_vm9  ;;  %v1448_v5 = vpack.c.bf16 %v360_v1, %v359_v0 }
 0x10a   : > { %1434 = vmatpush3.bf16.msra.mxu1 %v1433_v58 }
 0x10b   : > { %1435 = vmatprep.subr.bf16.mxu1 %v1900_v42 }
 0x10c   : > { %1410 = vmatpush3.bf16.msra.mxu0 %v1409_v9 }
 0x10d   : > { %1412 = vmatprep.subr.bf16.mxu0 %v1411_v15  ;;  %v363_v15 = vld [vmem:[#allocation11 + $0x20] sm:$0xff] }
 0x10e   : > { %1437 = vmatpush3.bf16.msra.mxu1 %v1436_v3  ;;  %v1454_v17 = vpack.c.bf16 %v364_v16, %v363_v15 }
 0x10f   : > { %1438 = vmatprep.subr.bf16.mxu1 %v1900_v42 }
 0x110   : > { %1414 = vmatpush3.bf16.msra.mxu0 %v1413_v18  ;;  %v365_v18 = vld [vmem:[#allocation11 + $0x30] sm:$0xff] }
 0x111   : > { %1416 = vmatprep.subr.bf16.mxu0 %v1415_v24  ;;  %v1457_v20 = vpack.c.bf16 %v366_v19, %v365_v18  ;;  %v369_v24 = vld [vmem:[#allocation11 + $0x50] sm:$0xff] }
 0x112   : > { %1440 = vmatpush3.bf16.msra.mxu1 %v1439_v12  ;;  %v1463_v26 = vpack.c.bf16 %v370_v25, %v369_v24 }
 0x113   : > { %1441 = vmatprep.subr.bf16.mxu1 %v1900_v42 }
 0x114   : > { %1418 = vmatpush3.bf16.msra.mxu0 %v1417_v27  ;;  %v371_v27 = vld [vmem:[#allocation11 + $0x60] sm:$0xff] }
 0x115   : > { %1420 = vmatprep.subr.bf16.mxu0 %v1419_v36  ;;  %v1466_v29 = vpack.c.bf16 %v372_v28, %v371_v27 }
 0x116   : > { %1443 = vmatpush3.bf16.msra.mxu1 %v1442_v21  ;;  %v367_v21 = vld [vmem:[#allocation11 + $0x40] sm:$0xff] }
 0x117   : > { %1444 = vmatprep.subr.bf16.mxu1 %v1900_v42  ;;  %v1460_v23 = vpack.c.bf16 %v368_v22, %v367_v21 }
 0x118   : > { %1422 = vmatpush3.bf16.msra.mxu0 %v1421_v37 }
 0x11a   : > { %1446 = vmatpush3.bf16.msra.mxu1 %v1445_v31  ;;  %v374_v31 = vld [vmem:[#allocation11 + $0x78] sm:$0xff] }
 0x11b   : > { %1447 = vmatprep.subr.bf16.mxu1 %v1900_v42  ;;  %v1469_v32 = vpack.c.bf16 %v374_v31, %v373_v30 }
 0x1ce   : > { %v1129_v40 = vpop.f32.mrb[0].mxu0 }
 0x1cf   : > { %v1130_v43 = vpop.f32.mrb[1].mxu0 }
 0x1d0   : > { %v1131_v48 = vadd.f32 %v1130_v43, %v1129_v40  ;;  %v1256_v49 = vpop.f32.mrb[0].mxu1 }
 0x1d1   : > { %v599_v50 = vpop.f32.mrb[1].mxu1 }
 0x1d2   : > { %v1132_v52 = vpop.f32.mrb[2].mxu0  ;;  %v525_v53 = vadd.f32 %v1131_v48, %v1088_v44 }
 0x1d3   : > { %v1133_v54 = vpop.f32.mrb[3].mxu0 }
 0x1d4   : > { %v1134_v56 = vadd.f32 %v1133_v54, %v1132_v52  ;;  %v600_v57 = vadd.f32 %v599_v50, %v525_v53 }
 0x1d6   : > { %v530_v58 = vadd.f32 %v1134_v56, %v1088_v44  ;;  %vm608_vm7 = vcmp.ge.f32.partialorder %v600_v57, 0.0  ;;  %v610_v59 = vmul.f32 0.2, %v600_v57 }
 0x1d8   : > { %v605_v60 = vadd.f32 %v1256_v49, %v530_v58  ;;  %v612_v61 = vsel %vm608_vm7, %v600_v57, %v610_v59 }
 0x1d9   : > { %v632_v2 = vsel %vm2268_vm10, %v612_v61, 0.0 }
 0x1da   : > { %vm609_vm11 = vcmp.ge.f32.partialorder %v605_v60, 0.0  ;;  %v611_v63 = vmul.f32 0.2, %v605_v60  ;;  %v640_v6 = vrot.slane %v632_v2, 2  ;;  %v636_v7 = vrot.slane %v632_v2, 1 }
 0x1dc   : > { %v613_v3 = vsel %vm609_vm11, %v605_v60, %v611_v63 }
 0x1dd   : > { %v633_v4 = vsel %vm627_vm12, %v613_v3, 0.0 }
 0x1de   : > { %v637_v8 = vrot.slane %v633_v4, 1  ;;  %v641_v9 = vrot.slane %v633_v4, 2 }
 0x1e0   : > { %v638_v12 = vsel %vm383_vm2, %v636_v7, %v637_v8  ;;  %v642_v13 = vsel %vm387_vm3, %v640_v6, %v641_v9 }
 0x1e1   : > { %763 = vmatprep.mubr.f32.mxu0 %v638_v12  ;;  %1290 = vmatmul.mubr.f32.vlgmr.msra.gmra.mrb[2].mxu1 %v642_v13 }
 0x1e2   : > { %1449 = vmatpush3.bf16.msra.mxu1 %v1448_v5  ;;  %1092 = vmatmul.mubr.msk.f32.vlgmr.msra.gmra.mrb[4].mxu0 %vm2268_vm10, %v612_v61 }
 0x1e3   : > { %1450 = vmatprep.subr.bf16.mxu1 %v1900_v42  ;;  %1324 = vmatprep.mubr.msk.f32.mxu1 %vm1901_vm4, %v1902_v35  ;;  %v844_v35 = vsel %vm841_vm13, %v842_v33, %v843_v34 }
 0x1e6   : > { %1452 = vmatpush3.bf16.msra.mxu1 %v1451_v14 }
 0x1e7   : > { %1453 = vmatprep.subr.bf16.mxu1 %v1900_v42 }
 0x1ea   : > { %1455 = vmatpush3.bf16.msra.mxu1 %v1454_v17 }
 0x1eb   : > { %1456 = vmatprep.subr.bf16.mxu1 %v1900_v42 }
 0x1ee   : > { %1458 = vmatpush3.bf16.msra.mxu1 %v1457_v20 }
 0x1ef   : > { %1459 = vmatprep.subr.bf16.mxu1 %v1900_v42 }
 0x1f2   : > { %1461 = vmatpush3.bf16.msra.mxu1 %v1460_v23 }
 0x1f3   : > { %1462 = vmatprep.subr.bf16.mxu1 %v1900_v42 }
 0x1f6   : > { %1464 = vmatpush3.bf16.msra.mxu1 %v1463_v26 }
 0x1f7   : > { %1465 = vmatprep.subr.bf16.mxu1 %v1900_v42 }
 0x1fa   : > { %1467 = vmatpush3.bf16.msra.mxu1 %v1466_v29 }
 0x1fb   : > { %1468 = vmatprep.subr.bf16.mxu1 %v1900_v42 }
 0x1fe   : > { %1470 = vmatpush3.bf16.msra.mxu1 %v1469_v32 }
 0x201   : > { %1325 = vmatmul.mubr.f32.vlgmr.msra.gmra.mrb[2].mxu1 %v844_v35 }
 0x2b5   : > { %v1185_v36 = vpop.f32.mrb[4].mxu0 }
 0x2b6   : > { %v1186_v37 = vpop.f32.mrb[5].mxu0 }
 0x2b7   : > { %v1187_v38 = vadd.f32 %v1186_v37, %v1185_v36 }
 0x2b9   : > { %v766_v40 = vadd.f32 %v1187_v38, %v1091_v39 }
 0x2d4   : > { %v912_v41 = vpop.f32.mrb[2].mxu1 }
 0x2d5   : > { %v1471_v46 = vadd.f32 %v912_v41, %v766_v40  ;;  %v1326_v47 = vpop.f32.mrb[3].mxu1 }
 0x2d7   : > { %v916_v42 = vmul.f32 0.70710677, %v1471_v46 }
 0x2d9   : > { %917 = vst [vmem:[%s356_s16] sm:$0xff] %v916_v42 }
 0x2da   : > { %1793 = shalt.err (!%p1790_p1)
}
 0x2db   : > { %s1794_s25 = scalar_lea.hbm %s2294_s15, 128  ;;  %s1798_s30 = scalar_lea.hbm %s2391_s3, 768 }
 0x2dc   : > { %p1795_p3 = scmp.ne.s32.totalorder %s2294_s15, %s1794_s25  ;;  %p1799_p0 = scmp.lt.u32.totalorder %s2294_s15, %s2391_s3 }
 0x2dd   : > { %p1800_p5 = scmp.lt.u32.totalorder %s1798_s30, %s1794_s25  ;;  %p1802_p2 = scmp.lt.u32.totalorder %s1794_s25, %s2294_s15 }
 0x2de   : > { %p1796_p12 = pnand %p1795_p3, %p2392_p6 }
 0x2df   : > { %p1801_p4 = por %p1800_p5, %p1799_p0 }
 0x2e0   : > { %p1797_p13 = pneg %p1796_p12 }
 0x2e1   : > { %p1803_p7 = por %p1802_p2, %p1801_p4 }
 0x2e3   : > { %p1804_p11 = pnand %p1803_p7, %p1797_p13 }
 0x2e5   : > { %1807 = shalt.err (!%p1804_p11)
}
 0x2e6   : > { %1498 = dma.vmem_to_hbm [thread:$0]  (%p2392_p6), %s2296_s14, 128, %s2294_s15, %s919_s24  }
 0x2e7 PF: > { %p1535_p8 = scmp.ge.s32.totalorder %s1890_s28, 2  ;;  %s946_s11 = sand.u32 1, %s1862_s21  }
 0x2e8   : > { %p2393_p9 = scmp.ne.s32.totalorder %s2383_s12, 0  ;;  %s947_s16 = scalar_lea.sflag [#allocation4], %s946_s11 }
 0x2ea   : > { %p1521_p10 = pnand %p1535_p8, %p2393_p9 }
 0x2ec   : > { %1857 = dma.done.wait (!%p1521_p10), %s947_s16, 128  }
 0x2ed   : > { %1859 = vsyncadd (!%p1521_p10), %s947_s16, 4294967168  ;;  %s25_s28 = sadd.s32 1, %s1890_s28   ;;  %s2394_s21 = smov %s1866_s22 }
 0x2ee   : > { %p22_p1 = scmp.ge.s32.totalorder %s25_s28, 8   ;;  %s2395_s22 = smov %s1870_s23 }
 0x2ef   : > { %s2396_s23 = smov %s2165_s29  ;;  %s2397_s24 = smov %s1882_s26 }
 0x2f0   : > { %s2398_s25 = smov %s1886_s27  ;;  %s2399_s26 = smov %s2402_s20 }
 0x2f1   : > { %s2400_s27 = smov %s2406_s18  ;;  %24 = sbr.rel (!%p22_p1) target bundleno = 16 (0x10), region = 109 }
 0x2f8   :  { %952 = vsyncpa [#allocation3], 1 }
 0x2f9   :  { %954 = vsyncpa [#allocation3 + $0x1], 1 }
 0x2fa   :  { %955 = vsyncpa [#allocation6], 1 }
 0x2fb   :  { %956 = vsyncpa [#allocation9], 1 }
 0x2fc   :  { %957 = vsyncpa [#allocation12], 1 }
 0x2fd   :  { %958 = vsyncpa [#allocation4], 1 }
 0x2fe   :  { %960 = vsyncpa [#allocation4 + $0x1], 1 }

</bundles_post_ra>
